<compile_context>
chip_gen: v6e
topology: v6e:2x2x1
jax: 0.10.0
libtpu: 0.0.40
codegen_flags: <defaults>
</compile_context>

<pallas_src>
import functools

import jax
import jax.numpy as jnp
from jax.experimental import pallas as pl
from jax.experimental.pallas import tpu as pltpu


def _round_up(x: int, m: int) -> int:
    return ((x + m - 1) // m) * m


def _classifier_kernel(x_ref, w_ref, b_ref, o_ref, acc_ref, *, mxu_dtype):
    k = pl.program_id(2)

    @pl.when(k == 0)
    def _():
        acc_ref[...] = jnp.zeros_like(acc_ref)

    # ReLU on the VPU (f32), cast operands to the MXU dtype, accumulate in f32.
    h = jnp.maximum(x_ref[...], 0.0).astype(mxu_dtype)
    acc_ref[...] += jnp.dot(h, w_ref[...].astype(mxu_dtype),
                            preferred_element_type=jnp.float32)

    # Bias add + dtype cast only once, on the last K step (finalize).
    @pl.when(k == pl.num_programs(2) - 1)
    def _():
        o_ref[...] = (acc_ref[...] + b_ref[...].astype(jnp.float32)).astype(o_ref.dtype)


def classifier_amda_forward(x, w, b, *, mxu_dtype=jnp.bfloat16, out_dtype=None,
                            tm=256, tn=256, tk=512):
    """relu(x) @ w + b.

    x: (B, H), w: (H, O), b: (1, O).  Returns (B, O) in out_dtype (default x.dtype).
    """
    B, H = x.shape
    H2, O = w.shape
    assert H == H2 and b.shape == (1, O)
    out_dtype = out_dtype if out_dtype is not None else x.dtype

    # Tile sizes: clamp to the (aligned) problem, keep sublane/lane alignment.
    tm = max(8, min(tm, _round_up(B, 8)))
    tn = max(128, min(tn, _round_up(O, 128)))   # lane-dense output (>= 128 lanes)
    tk = max(128, min(tk, _round_up(H, 128)))

    # Pad so every grid axis divides exactly; zero padding is harmless:
    # relu(0)=0 contributes nothing to the dot and padded bias columns are 0.
    M, N, K = _round_up(B, tm), _round_up(O, tn), _round_up(H, tk)
    xp = jnp.pad(x, ((0, M - B), (0, K - H)))
    wp = jnp.pad(w, ((0, K - H), (0, N - O)))
    bp = jnp.pad(b, ((0, 0), (0, N - O)))

    grid = (M // tm, N // tn, K // tk)

    # VMEM budget: double-buffered input tiles + output tile + f32 accumulator.
    in_itemsize = jnp.dtype(x.dtype).itemsize
    out_itemsize = jnp.dtype(out_dtype).itemsize
    vmem_bytes = (2 * (tm * tk + tk * tn + tn) * in_itemsize
                  + 2 * tm * tn * out_itemsize
                  + tm * tn * 4)
    # Explicit scoped-VMEM limit; 32 MiB is safe on v5e/v6e (128 MiB physical)
    # and matches the v7x scoped default (64 MiB physical per TC).
    vmem_limit = min(32 << 20, max(16 << 20, 2 * vmem_bytes))

    cost = pl.CostEstimate(
        flops=2 * M * N * K,
        transcendentals=0,
        bytes_accessed=(M * K + K * N + N) * in_itemsize + M * N * out_itemsize,
    )

    kernel = functools.partial(_classifier_kernel, mxu_dtype=mxu_dtype)
    out_padded = pl.pallas_call(
        kernel,
        out_shape=jax.ShapeDtypeStruct((M, N), out_dtype),
        grid_spec=pltpu.PrefetchScalarGridSpec(
            num_scalar_prefetch=0,
            grid=grid,
            in_specs=[
                pl.BlockSpec((tm, tk), lambda i, j, k: (i, k)),   # x tile
                pl.BlockSpec((tk, tn), lambda i, j, k: (k, j)),   # w tile
                pl.BlockSpec((1, tn), lambda i, j, k: (0, j)),    # bias tile
            ],
            out_specs=pl.BlockSpec((tm, tn), lambda i, j, k: (i, j)),
            scratch_shapes=[pltpu.VMEM((tm, tn), jnp.float32)],
        ),
        compiler_params=pltpu.CompilerParams(
            dimension_semantics=("parallel", "parallel", "arbitrary"),
            vmem_limit_bytes=vmem_limit,
        ),
        cost_estimate=cost,
    )(xp, wp, bp)

    return out_padded[:B, :O]


def _reference(x, w, b, mxu_dtype=jnp.bfloat16):
    # Same numerics as the kernel: bf16 MXU operands, f32 accumulation, f32 bias.
    h = jnp.maximum(x, 0.0).astype(mxu_dtype)
    acc = jnp.dot(h, w.astype(mxu_dtype), preferred_element_type=jnp.float32)
    return acc + b


if __name__ == "__main__":
    key = jax.random.PRNGKey(0)

    # 1) Small shapes implied by the module: Linear(hidden_dim=32 -> output_dim=16).
    batch, hidden_dim, output_dim = 8, 32, 16
    kx, kw, kb, k2 = jax.random.split(key, 4)
    x = jax.random.normal(kx, (batch, hidden_dim), dtype=jnp.float32)
    w = jax.random.normal(kw, (hidden_dim, output_dim), dtype=jnp.float32) * 0.1
    b = jax.random.normal(kb, (1, output_dim), dtype=jnp.float32) * 0.1

    out = jax.block_until_ready(classifier_amda_forward(x, w, b))
    ref = _reference(x, w, b)
    assert out.shape == (batch, output_dim)
    assert jnp.allclose(out, ref, atol=2e-3, rtol=2e-3), "mismatch (small shape)"

    # 2) A shape that exercises the full (M, N, K) grid, K-reduction accumulator,
    #    padding, and multi-tile parallel axes.
    B2, H2, O2 = 384, 1024, 320
    kx2, kw2, kb2 = jax.random.split(k2, 3)
    x2 = jax.random.normal(kx2, (B2, H2), dtype=jnp.float32)
    w2 = jax.random.normal(kw2, (H2, O2), dtype=jnp.float32) * 0.05
    b2 = jax.random.normal(kb2, (1, O2), dtype=jnp.float32) * 0.1

    out2 = jax.block_until_ready(classifier_amda_forward(x2, w2, b2))
    ref2 = _reference(x2, w2, b2)
    assert out2.shape == (B2, O2)
    assert jnp.allclose(out2, ref2, atol=5e-2, rtol=5e-2), "mismatch (tiled shape)"

    print("KERNEL_OK")
</pallas_src>

<mosaic_0001>
module attributes {stable_mosaic.version = 11 : i64} {
  func.func @_classifier_kernel(%arg0: i32, %arg1: i32, %arg2: i32, %arg3: memref<8x128xf32, #tpu.memory_space<vmem>>, %arg4: memref<128x128xf32, #tpu.memory_space<vmem>>, %arg5: memref<1x128xf32, #tpu.memory_space<vmem>>, %arg6: memref<8x128xf32, #tpu.memory_space<vmem>>, %arg7: memref<8x128xf32, #tpu.memory_space<vmem>>) attributes {dimension_semantics = [#tpu.dimension_semantics<parallel>, #tpu.dimension_semantics<parallel>, #tpu.dimension_semantics<arbitrary>], iteration_bounds = array<i64: 1, 1, 1>, scalar_prefetch = 0 : i64, scratch_operands = 1 : i64, tpu.core_type = #tpu.core_type<tc>, window_params = [{transform_indices = @transform_0, window_bounds = array<i64: 8, 128>}, {transform_indices = @transform_1, window_bounds = array<i64: 128, 128>}, {transform_indices = @transform_2, window_bounds = array<i64: 1, 128>}, {transform_indices = @transform_3, window_bounds = array<i64: 8, 128>}]} {
    %c0_i32 = arith.constant 0 : i32
    %0 = arith.cmpi eq, %arg2, %c0_i32 : i32
    %1 = arith.extui %0 : i1 to i32
    %c0_i32_0 = arith.constant 0 : i32
    %2 = arith.cmpi ne, %1, %c0_i32_0 : i32
    scf.if %2 {
      %cst_11 = arith.constant 0.000000e+00 : f32
      %16 = vector.broadcast %cst_11 : f32 to vector<8x128xf32>
      %c0_12 = arith.constant 0 : index
      %c0_13 = arith.constant 0 : index
      %17 = vector.load %arg7[%c0_12, %c0_13] : memref<8x128xf32, #tpu.memory_space<vmem>>, vector<8x128xf32>
      tpu.vector_store %arg7[%c0_12, %c0_13], %16 {strides = array<i32>} : memref<8x128xf32, #tpu.memory_space<vmem>>, vector<8x128xf32>,
    } else {
    }
    %c0 = arith.constant 0 : index
    %c0_1 = arith.constant 0 : index
    %3 = vector.load %arg3[%c0, %c0_1] : memref<8x128xf32, #tpu.memory_space<vmem>>, vector<8x128xf32>
    %cst = arith.constant 0.000000e+00 : f32
    %4 = vector.broadcast %cst : f32 to vector<8x128xf32>
    %5 = arith.maximumf %3, %4 : vector<8x128xf32>
    %6 = arith.truncf %5 : vector<8x128xf32> to vector<8x128xbf16>
    %c0_2 = arith.constant 0 : index
    %c0_3 = arith.constant 0 : index
    %7 = vector.load %arg7[%c0_2, %c0_3] : memref<8x128xf32, #tpu.memory_space<vmem>>, vector<8x128xf32>
    %c0_4 = arith.constant 0 : index
    %c0_5 = arith.constant 0 : index
    %8 = vector.load %arg4[%c0_4, %c0_5] : memref<128x128xf32, #tpu.memory_space<vmem>>, vector<128x128xf32>
    %9 = arith.truncf %8 : vector<128x128xf32> to vector<128x128xbf16>
    %cst_6 = arith.constant dense<0.000000e+00> : vector<8x128xf32>
    %10 = tpu.matmul %6, %9, %cst_6 {dimension_numbers = #tpu.dot_dimension_numbers<[1], [0], [0], [1], [0, 0, 1, 1], [], []>} : vector<8x128xbf16>, vector<128x128xbf16>, vector<8x128xf32> -> vector<8x128xf32>
    %11 = arith.addf %7, %10 : vector<8x128xf32>
    %c0_7 = arith.constant 0 : index
    %c0_8 = arith.constant 0 : index
    %12 = vector.load %arg7[%c0_7, %c0_8] : memref<8x128xf32, #tpu.memory_space<vmem>>, vector<8x128xf32>
    tpu.vector_store %arg7[%c0_7, %c0_8], %11 {strides = array<i32>} : memref<8x128xf32, #tpu.memory_space<vmem>>, vector<8x128xf32>,
    %c0_i32_9 = arith.constant 0 : i32
    %13 = arith.cmpi eq, %arg2, %c0_i32_9 : i32
    %14 = arith.extui %13 : i1 to i32
    %c0_i32_10 = arith.constant 0 : i32
    %15 = arith.cmpi ne, %14, %c0_i32_10 : i32
    scf.if %15 {
      %c0_11 = arith.constant 0 : index
      %c0_12 = arith.constant 0 : index
      %16 = vector.load %arg7[%c0_11, %c0_12] : memref<8x128xf32, #tpu.memory_space<vmem>>, vector<8x128xf32>
      %c0_13 = arith.constant 0 : index
      %c0_14 = arith.constant 0 : index
      %17 = vector.load %arg5[%c0_13, %c0_14] : memref<1x128xf32, #tpu.memory_space<vmem>>, vector<1x128xf32>
      %18 = vector.broadcast %17 : vector<1x128xf32> to vector<8x128xf32>
      %19 = arith.addf %16, %18 : vector<8x128xf32>
      %c0_15 = arith.constant 0 : index
      %c0_16 = arith.constant 0 : index
      %20 = vector.load %arg6[%c0_15, %c0_16] : memref<8x128xf32, #tpu.memory_space<vmem>>, vector<8x128xf32>
      tpu.vector_store %arg6[%c0_15, %c0_16], %19 {strides = array<i32>} : memref<8x128xf32, #tpu.memory_space<vmem>>, vector<8x128xf32>,
    } else {
    }
    return
  }
  func.func @transform_0(%arg0: i32, %arg1: i32, %arg2: i32) -> (i32, i32) {
    %c0_i32 = arith.constant 0 : i32
    return %arg0, %arg2 : i32, i32
  }
  func.func @transform_1(%arg0: i32, %arg1: i32, %arg2: i32) -> (i32, i32) {
    %c0_i32 = arith.constant 0 : i32
    return %arg2, %arg1 : i32, i32
  }
  func.func @transform_2(%arg0: i32, %arg1: i32, %arg2: i32) -> (i32, i32) {
    %c0_i32 = arith.constant 0 : i32
    %c0_i32_0 = arith.constant 0 : i32
    return %c0_i32, %arg1 : i32, i32
  }
  func.func @transform_3(%arg0: i32, %arg1: i32, %arg2: i32) -> (i32, i32) {
    %c0_i32 = arith.constant 0 : i32
    return %arg0, %arg1 : i32, i32
  }
}

</mosaic_0001>

<bundles_post_ra>
// kernel: tpu_custom_call.1
= control target key start
LH: loop header
LB: loop body
LE: loop exit
PB: predicated region body
PF: predicated region fallthrough
CT: control target
= control target key end

     0   :  { %8 = vsyncpa [#allocation4], 0  ;;  %s288_s0 = inlined_call_operand.hbm [shape: f32[8,128], index: 0, kind: input, shape index: {}]   ;;  %s289_s1 = inlined_call_operand.hbm [shape: f32[128,128], index: 1, kind: input, shape index: {}]   ;;  %s290_s2 = inlined_call_operand.vmem [shape: f32[1,128], index: 2, kind: input, shape index: {}]   ;;  %s291_s3 = inlined_call_operand.hbm [shape: f32[8,128], index: 3, kind: output, shape index: {}]  }
   0x1   :  { %9 = vsyncpa [#allocation7], 0 }
   0x2   :  { %10 = vsyncpa [#allocation5], 0  ;;  %s249_s12 = smov [#allocation3]   ;;  %s250_s14 = smov [#allocation6]  }
   0x3   :  { %s17_s13 = sshll.u32 %s249_s12, 4  ;;  %s26_s15 = sshll.u32 %s250_s14, 4  ;;  %s18_s13 = int_to_ptr.vmem [resolvable:$true] %s17_s13  ;;  %s27_s15 = int_to_ptr.vmem [resolvable:$true] %s26_s15 }
   0x4   :  { %s191_s16 = scalar_lea.vmem %s18_s13, 128  ;;  %p196_p1 = scmp.lt.s32.totalorder %s18_s13, %s18_s13 }
   0x5   :  { %p192_p0 = scmp.ne.s32.totalorder %s18_s13, %s191_s16  ;;  %p197_p2 = scmp.lt.s32.totalorder %s191_s16, %s191_s16 }
   0x7   :  { %p198_p3 = por %p197_p2, %p196_p1 }
   0x9   :  { %p199_p4 = pnand %p198_p3, %p192_p0 }
   0xb   :  { %202 = shalt.err (!%p199_p4)
}
   0xc   :  { %20 = dma.hbm_to_vmem [thread:$0]  %s288_s0, 128, %s18_s13, [#allocation4]  }
   0xd   :  { %s211_s19 = scalar_lea.vmem %s27_s15, 2048  ;;  %p216_p6 = scmp.lt.s32.totalorder %s27_s15, %s27_s15 }
   0xe   :  { %p212_p5 = scmp.ne.s32.totalorder %s27_s15, %s211_s19  ;;  %p217_p7 = scmp.lt.s32.totalorder %s211_s19, %s211_s19 }
  0x10   :  { %p218_p8 = por %p217_p7, %p216_p6 }
  0x12   :  { %p219_p9 = pnand %p218_p8, %p212_p5 }
  0x14   :  { %222 = shalt.err (!%p219_p9)
}
  0x15   :  { %s251_s20 = smov 128   ;;  %s252_s21 = smov 8  }
  0x16   :  { %32 = dma.hbm_to_vmem [thread:$0]  %s289_s1, 2048, %s27_s15, [#allocation7], %s251_s20, %s251_s20, %s252_s21  }
  0x17   :  { %243 = dma.done.wait [#allocation4], 128  }
  0x18   :  { %244 = vsyncadd [#allocation4], 4294967168 }
  0x19   :  { %245 = dma.done.wait [#allocation7], 2048  }
  0x1a   :  { %246 = vsyncadd [#allocation7], 4294965248  ;;  %v253_v0 = vmov 0.0   ;;  %vm254_vm0 = vmmov 0   ;;  %v65_v1 = vld [vmem:[#allocation6 + $0x70] sm:$0xff]  ;;  %v66_v2 = vld [vmem:[#allocation6 + $0x78] sm:$0xff] }
  0x1b   :  { %156 = vmatprep.subr.bf16.mxu0 %v253_v0  ;;  %172 = vmatprep.mubr.msk.bf16.mxu0 %vm254_vm0, %v253_v0  ;;  %v63_v3 = vld [vmem:[#allocation6 + $0x60] sm:$0xff]  ;;  %v74_v4 = vpack.c.bf16 %v66_v2, %v65_v1  ;;  %v64_v5 = vld [vmem:[#allocation6 + $0x68] sm:$0xff]  ;;  %v61_v7 = vld [vmem:[#allocation6 + $0x50] sm:$0xff]  ;;  %s255_s24 = smov [#allocation8]  }
  0x1c   :  { %v73_v6 = vpack.c.bf16 %v64_v5, %v63_v3  ;;  %v62_v8 = vld [vmem:[#allocation6 + $0x58] sm:$0xff]  ;;  %v59_v10 = vld [vmem:[#allocation6 + $0x40] sm:$0xff]  ;;  %v60_v11 = vld [vmem:[#allocation6 + $0x48] sm:$0xff]  ;;  %s136_s25 = sshll.u32 %s255_s24, 4  ;;  %s137_s25 = int_to_ptr.vmem [resolvable:$true] %s136_s25 }
  0x1d   :  { %157 = vmatpush3.bf16.msra.mxu0 %v74_v4  ;;  %v72_v9 = vpack.c.bf16 %v62_v8, %v61_v7  ;;  %v71_v12 = vpack.c.bf16 %v60_v11, %v59_v10  ;;  %v57_v13 = vld [vmem:[#allocation6 + $0x30] sm:$0xff]  ;;  %v58_v14 = vld [vmem:[#allocation6 + $0x38] sm:$0xff]  ;;  %v55_v16 = vld [vmem:[#allocation6 + $0x20] sm:$0xff]  ;;  %s223_s26 = scalar_lea.vmem %s137_s25, 128  ;;  %p228_p11 = scmp.lt.s32.totalorder %s137_s25, %s137_s25 }
  0x1e   :  { %158 = vmatprep.subr.bf16.mxu0 %v253_v0  ;;  %v70_v15 = vpack.c.bf16 %v58_v14, %v57_v13  ;;  %v56_v17 = vld [vmem:[#allocation6 + $0x28] sm:$0xff]  ;;  %v53_v19 = vld [vmem:[#allocation6 + $0x10] sm:$0xff]  ;;  %v54_v20 = vld [vmem:[#allocation6 + $0x18] sm:$0xff]  ;;  %p224_p10 = scmp.ne.s32.totalorder %s137_s25, %s223_s26  ;;  %p229_p12 = scmp.lt.s32.totalorder %s223_s26, %s223_s26 }
  0x1f   :  { %v69_v18 = vpack.c.bf16 %v56_v17, %v55_v16  ;;  %v68_v21 = vpack.c.bf16 %v54_v20, %v53_v19  ;;  %v47_v22 = vld [vmem:[#allocation3] sm:$0xff]  ;;  %v51_v23 = vld [vmem:[#allocation6] sm:$0xff]  ;;  %v52_v24 = vld [vmem:[#allocation6 + $0x8] sm:$0xff] }
  0x20   :  { %v48_v25 = vmax.f32 %v47_v22, 0.0  ;;  %v67_v26 = vpack.c.bf16 %v52_v24, %v51_v23  ;;  %v146_v28 = vld [vmem:[%s290_s2] ss:$0 sm:$0xff]  ;;  %p230_p13 = por %p229_p12, %p228_p11 }
  0x21   :  { %159 = vmatpush3.bf16.msra.mxu0 %v73_v6 }
  0x22   :  { %160 = vmatprep.subr.bf16.mxu0 %v253_v0  ;;  %v49_v27 = vpack.c.bf16 %v48_v25, %v48_v25  ;;  %p231_p0 = pnand %p230_p13, %p224_p10 }
  0x25   :  { %161 = vmatpush3.bf16.msra.mxu0 %v72_v9 }
  0x26   :  { %162 = vmatprep.subr.bf16.mxu0 %v253_v0 }
  0x29   :  { %163 = vmatpush3.bf16.msra.mxu0 %v71_v12 }
  0x2a   :  { %164 = vmatprep.subr.bf16.mxu0 %v253_v0 }
  0x2d   :  { %165 = vmatpush3.bf16.msra.mxu0 %v70_v15 }
  0x2e   :  { %166 = vmatprep.subr.bf16.mxu0 %v253_v0 }
  0x31   :  { %167 = vmatpush3.bf16.msra.mxu0 %v69_v18 }
  0x32   :  { %168 = vmatprep.subr.bf16.mxu0 %v253_v0 }
  0x35   :  { %169 = vmatpush3.bf16.msra.mxu0 %v68_v21 }
  0x36   :  { %170 = vmatprep.subr.bf16.mxu0 %v253_v0 }
  0x39   :  { %171 = vmatpush3.bf16.msra.mxu0 %v67_v26 }
  0x3c   :  { %173 = vmatmul.mubr.bf16.vlgmr.msra.gmra.mxu0 %v49_v27 }
  0xfc   :  { %v109_v29 = vpop.f32.mrf.mxu0 }
  0xfd   :  { %v128_v30 = vadd.f32 %v146_v28, %v109_v29 }
  0xfe   :  { %v174_v31 = vpop.f32.mrf.mxu0 }
  0xff   :  { %129 = vst [vmem:[#allocation8] sm:$0xff] %v128_v30 }
 0x100   :  { %v112_v32 = vpop.f32.mrf.mxu0 }
 0x101   :  { %234 = shalt.err (!%p231_p0)
}
 0x102   :  { %139 = dma.vmem_to_hbm [thread:$0]  %s137_s25, 128, %s291_s3, [#allocation5]   ;;  %v175_v33 = vpop.f32.mrf.mxu0 }
 0x103   :  { %247 = dma.done.wait [#allocation5], 128  }
 0x104   :  { %248 = vsyncadd [#allocation5], 4294967168 }
 0x105   :  { %143 = vsyncpa [#allocation4], 1 }
 0x106   :  { %144 = vsyncpa [#allocation7], 1 }
 0x107   :  { %145 = vsyncpa [#allocation5], 1 }

</bundles_post_ra>
